<compile_context>
chip_gen: v5e
topology: v5e:2x2
jax: 0.10.0
libtpu: 0.0.40
codegen_flags: <defaults>
</compile_context>

<pallas_src>
import functools

import jax
import jax.numpy as jnp
from jax.experimental import pallas as pl
from jax.experimental.pallas import tpu as pltpu

_LANE = 128
_SUBLANE = 8

# Grid-invariant blocks (weights/biases) only need a single VMEM buffer.
_SINGLE_BUF_KW = {"pipeline_mode": pl.Buffered(1)} if hasattr(pl, "Buffered") else {}


def _round_up(n, m):
    return -(-n // m) * m


def _mlp_kernel(x_ref,
                w1_ref, b1_ref,
                w2_ref, b2_ref,
                w3_ref, b3_ref,
                w4_ref, b4_ref,
                w5_ref, b5_ref,
                o_ref):
    h = x_ref[...]  # already f32 (cast happens wrapper-side)

    def linear(h, w_ref, b_ref):
        w = w_ref[...]
        # Cast the activation to the weight dtype only at the MXU input
        # (bf16 x bf16 matmul with f32 accumulate when use_bf16=True);
        # bias add / ReLU stay in f32.
        return jnp.dot(h.astype(w.dtype), w,
                       preferred_element_type=jnp.float32) + b_ref[...]

    h = jnp.maximum(linear(h, w1_ref, b1_ref), 0.0)   # fc1 + relu
    # dropout (eval mode) -> identity
    h = jnp.maximum(linear(h, w2_ref, b2_ref), 0.0)   # fc2 + relu
    h = jnp.maximum(linear(h, w3_ref, b3_ref), 0.0)   # fc3 + relu
    h = jnp.maximum(linear(h, w4_ref, b4_ref), 0.0)   # fc4 + relu
    o_ref[...] = linear(h, w5_ref, b5_ref).astype(o_ref.dtype)  # fc_out


@functools.partial(jax.jit, static_argnames=("batch_tile", "use_bf16"))
def _mlp_predict_adj_impl(x, params, *, batch_tile, use_bf16):
    B, F_in = x.shape
    out_size = params[-1][0].shape[1]

    # ---- Lane-pad every feature dim to a multiple of 128 (zero padding keeps
    # the math exact: padded weight rows/cols are zero, padded activations and
    # biases stay zero through ReLU).
    padded = []
    for (w, b) in params:
        d_in, d_out = w.shape
        dp_in, dp_out = _round_up(d_in, _LANE), _round_up(d_out, _LANE)
        w_p = jnp.zeros((dp_in, dp_out), jnp.float32).at[:d_in, :d_out].set(
            w.astype(jnp.float32))
        b_p = jnp.zeros((1, dp_out), jnp.float32).at[:, :d_out].set(
            b.astype(jnp.float32).reshape(1, d_out))
        if use_bf16:
            w_p = w_p.astype(jnp.bfloat16)  # one-time, wrapper-side
        padded.append((w_p, b_p))

    F_pad = padded[0][0].shape[0]
    out_pad = padded[-1][0].shape[1]
    B_pad = _round_up(B, batch_tile)

    x_p = jnp.zeros((B_pad, F_pad), jnp.float32).at[:B, :F_in].set(
        x.astype(jnp.float32))

    flat_params = []
    for (w, b) in padded:
        flat_params += [w, b]

    in_specs = [pl.BlockSpec((batch_tile, F_pad), lambda i: (i, 0))]
    for (w, b) in padded:
        # Weight/bias index_maps are constant across the grid.
        in_specs.append(pl.BlockSpec(w.shape, lambda i: (0, 0), **_SINGLE_BUF_KW))
        in_specs.append(pl.BlockSpec(b.shape, lambda i: (0, 0), **_SINGLE_BUF_KW))
    out_specs = pl.BlockSpec((batch_tile, out_pad), lambda i: (i, 0))

    out = pl.pallas_call(
        _mlp_kernel,
        out_shape=jax.ShapeDtypeStruct((B_pad, out_pad), jnp.float32),
        grid_spec=pltpu.PrefetchScalarGridSpec(
            num_scalar_prefetch=0,
            grid=(B_pad // batch_tile,),
            in_specs=in_specs,
            out_specs=out_specs,
        ),
        compiler_params=pltpu.CompilerParams(
            dimension_semantics=("parallel",),
        ),
    )(x_p, *flat_params)

    return out[:B, :out_size]


def mlp_predict_adj(x, params, *, batch_tile=None, use_bf16=False):
    """x: [B, input_size]. params: list of (W[in, out], b[1, out])."""
    B = x.shape[0]
    if batch_tile is None:
        # Big tiles (fixed ~0.35 us/grid-step overhead dominates small tiles),
        # but keep >=2 grid steps when the batch allows so the 'parallel' axis
        # can shard across both v7x TensorCores. Cap at 1024 rows to keep the
        # double-buffered x/out blocks well under the scoped-VMEM default.
        half = _round_up(-(-B // 2), _SUBLANE)
        batch_tile = max(_SUBLANE, min(1024, half))
    params = tuple((w, b) for (w, b) in params)
    return _mlp_predict_adj_impl(x, params, batch_tile=int(batch_tile),
                                 use_bf16=bool(use_bf16))


def init_params(key, input_size, hidden_channels, output_size):
    """Deterministic synthetic params. Stored as [in, out] (transposed vs torch)."""
    dims = [
        (input_size, hidden_channels),                 # fc1
        (hidden_channels, hidden_channels),            # fc2
        (hidden_channels, hidden_channels // 2),       # fc3
        (hidden_channels // 2, hidden_channels // 4),  # fc4
        (hidden_channels // 4, output_size),           # fc_out
    ]
    params = []
    for (d_in, d_out) in dims:
        key, kw, kb = jax.random.split(key, 3)
        w = jax.random.normal(kw, (d_in, d_out), dtype=jnp.float32) * (1.0 / jnp.sqrt(d_in))
        b = jax.random.normal(kb, (1, d_out), dtype=jnp.float32) * 0.01
        params.append((w, b))
    return params


def reference_mlp(x, params):
    h = x
    for i, (w, b) in enumerate(params):
        h = h @ w + b
        if i < len(params) - 1:
            h = jnp.maximum(h, 0.0)
    return h


if __name__ == "__main__":
    key = jax.random.PRNGKey(0)
    B = 128
    input_size = 64
    hidden_channels = 128          # module default
    output_size = input_size       # output_size=None -> input_size

    kx, kp = jax.random.split(key)
    x = jax.random.normal(kx, (B, input_size), dtype=jnp.float32)
    params = init_params(kp, input_size, hidden_channels, output_size)

    ref = reference_mlp(x, params)

    # f32 path (strict check)
    out = jax.block_until_ready(mlp_predict_adj(x, params))
    assert out.shape == (B, output_size)
    assert jnp.allclose(out, ref, atol=1e-4, rtol=1e-4), "f32 kernel mismatch vs reference"

    # Optional bf16-MXU path (fast path on v6e/v7x), f32 accumulate; loose tolerance.
    out_bf16 = jax.block_until_ready(mlp_predict_adj(x, params, use_bf16=True))
    assert out_bf16.shape == (B, output_size)
    assert jnp.allclose(out_bf16, ref, atol=0.5, rtol=0.1), "bf16 kernel diverged from reference"

    print("KERNEL_OK")
</pallas_src>

<mosaic_0001>
module attributes {stable_mosaic.version = 11 : i64} {
  func.func @_mlp_kernel(%arg0: i32, %arg1: memref<64x128xf32, #tpu.memory_space<vmem>>, %arg2: memref<128x128xf32, #tpu.memory_space<vmem>>, %arg3: memref<1x128xf32, #tpu.memory_space<vmem>>, %arg4: memref<128x128xf32, #tpu.memory_space<vmem>>, %arg5: memref<1x128xf32, #tpu.memory_space<vmem>>, %arg6: memref<128x128xf32, #tpu.memory_space<vmem>>, %arg7: memref<1x128xf32, #tpu.memory_space<vmem>>, %arg8: memref<128x128xf32, #tpu.memory_space<vmem>>, %arg9: memref<1x128xf32, #tpu.memory_space<vmem>>, %arg10: memref<128x128xf32, #tpu.memory_space<vmem>>, %arg11: memref<1x128xf32, #tpu.memory_space<vmem>>, %arg12: memref<64x128xf32, #tpu.memory_space<vmem>>) attributes {dimension_semantics = [#tpu.dimension_semantics<parallel>], iteration_bounds = array<i64: 2>, scalar_prefetch = 0 : i64, scratch_operands = 0 : i64, tpu.core_type = #tpu.core_type<tc>, window_params = [{transform_indices = @transform_0, window_bounds = array<i64: 64, 128>}, {pipeline_mode = #tpu.pipeline_mode<synchronous>, transform_indices = @transform_1, window_bounds = array<i64: 128, 128>}, {pipeline_mode = #tpu.pipeline_mode<synchronous>, transform_indices = @transform_2, window_bounds = array<i64: 1, 128>}, {pipeline_mode = #tpu.pipeline_mode<synchronous>, transform_indices = @transform_3, window_bounds = array<i64: 128, 128>}, {pipeline_mode = #tpu.pipeline_mode<synchronous>, transform_indices = @transform_4, window_bounds = array<i64: 1, 128>}, {pipeline_mode = #tpu.pipeline_mode<synchronous>, transform_indices = @transform_5, window_bounds = array<i64: 128, 128>}, {pipeline_mode = #tpu.pipeline_mode<synchronous>, transform_indices = @transform_6, window_bounds = array<i64: 1, 128>}, {pipeline_mode = #tpu.pipeline_mode<synchronous>, transform_indices = @transform_7, window_bounds = array<i64: 128, 128>}, {pipeline_mode = #tpu.pipeline_mode<synchronous>, transform_indices = @transform_8, window_bounds = array<i64: 1, 128>}, {pipeline_mode = #tpu.pipeline_mode<synchronous>, transform_indices = @transform_9, window_bounds = array<i64: 128, 128>}, {pipeline_mode = #tpu.pipeline_mode<synchronous>, transform_indices = @transform_10, window_bounds = array<i64: 1, 128>}, {transform_indices = @transform_11, window_bounds = array<i64: 64, 128>}]} {
    %c0 = arith.constant 0 : index
    %c0_0 = arith.constant 0 : index
    %0 = vector.load %arg1[%c0, %c0_0] : memref<64x128xf32, #tpu.memory_space<vmem>>, vector<64x128xf32>
    %c0_1 = arith.constant 0 : index
    %c0_2 = arith.constant 0 : index
    %1 = vector.load %arg2[%c0_1, %c0_2] : memref<128x128xf32, #tpu.memory_space<vmem>>, vector<128x128xf32>
    %cst = arith.constant dense<0.000000e+00> : vector<64x128xf32>
    %2 = tpu.matmul %0, %1, %cst {dimension_numbers = #tpu.dot_dimension_numbers<[1], [0], [0], [1], [0, 0, 1, 1], [], []>} : vector<64x128xf32>, vector<128x128xf32>, vector<64x128xf32> -> vector<64x128xf32>
    %c0_3 = arith.constant 0 : index
    %c0_4 = arith.constant 0 : index
    %3 = vector.load %arg3[%c0_3, %c0_4] : memref<1x128xf32, #tpu.memory_space<vmem>>, vector<1x128xf32>
    %4 = vector.broadcast %3 : vector<1x128xf32> to vector<64x128xf32>
    %5 = arith.addf %2, %4 : vector<64x128xf32>
    %cst_5 = arith.constant 0.000000e+00 : f32
    %6 = vector.broadcast %cst_5 : f32 to vector<64x128xf32>
    %7 = arith.maximumf %5, %6 : vector<64x128xf32>
    %c0_6 = arith.constant 0 : index
    %c0_7 = arith.constant 0 : index
    %8 = vector.load %arg4[%c0_6, %c0_7] : memref<128x128xf32, #tpu.memory_space<vmem>>, vector<128x128xf32>
    %cst_8 = arith.constant dense<0.000000e+00> : vector<64x128xf32>
    %9 = tpu.matmul %7, %8, %cst_8 {dimension_numbers = #tpu.dot_dimension_numbers<[1], [0], [0], [1], [0, 0, 1, 1], [], []>} : vector<64x128xf32>, vector<128x128xf32>, vector<64x128xf32> -> vector<64x128xf32>
    %c0_9 = arith.constant 0 : index
    %c0_10 = arith.constant 0 : index
    %10 = vector.load %arg5[%c0_9, %c0_10] : memref<1x128xf32, #tpu.memory_space<vmem>>, vector<1x128xf32>
    %11 = vector.broadcast %10 : vector<1x128xf32> to vector<64x128xf32>
    %12 = arith.addf %9, %11 : vector<64x128xf32>
    %cst_11 = arith.constant 0.000000e+00 : f32
    %13 = vector.broadcast %cst_11 : f32 to vector<64x128xf32>
    %14 = arith.maximumf %12, %13 : vector<64x128xf32>
    %c0_12 = arith.constant 0 : index
    %c0_13 = arith.constant 0 : index
    %15 = vector.load %arg6[%c0_12, %c0_13] : memref<128x128xf32, #tpu.memory_space<vmem>>, vector<128x128xf32>
    %cst_14 = arith.constant dense<0.000000e+00> : vector<64x128xf32>
    %16 = tpu.matmul %14, %15, %cst_14 {dimension_numbers = #tpu.dot_dimension_numbers<[1], [0], [0], [1], [0, 0, 1, 1], [], []>} : vector<64x128xf32>, vector<128x128xf32>, vector<64x128xf32> -> vector<64x128xf32>
    %c0_15 = arith.constant 0 : index
    %c0_16 = arith.constant 0 : index
    %17 = vector.load %arg7[%c0_15, %c0_16] : memref<1x128xf32, #tpu.memory_space<vmem>>, vector<1x128xf32>
    %18 = vector.broadcast %17 : vector<1x128xf32> to vector<64x128xf32>
    %19 = arith.addf %16, %18 : vector<64x128xf32>
    %cst_17 = arith.constant 0.000000e+00 : f32
    %20 = vector.broadcast %cst_17 : f32 to vector<64x128xf32>
    %21 = arith.maximumf %19, %20 : vector<64x128xf32>
    %c0_18 = arith.constant 0 : index
    %c0_19 = arith.constant 0 : index
    %22 = vector.load %arg8[%c0_18, %c0_19] : memref<128x128xf32, #tpu.memory_space<vmem>>, vector<128x128xf32>
    %cst_20 = arith.constant dense<0.000000e+00> : vector<64x128xf32>
    %23 = tpu.matmul %21, %22, %cst_20 {dimension_numbers = #tpu.dot_dimension_numbers<[1], [0], [0], [1], [0, 0, 1, 1], [], []>} : vector<64x128xf32>, vector<128x128xf32>, vector<64x128xf32> -> vector<64x128xf32>
    %c0_21 = arith.constant 0 : index
    %c0_22 = arith.constant 0 : index
    %24 = vector.load %arg9[%c0_21, %c0_22] : memref<1x128xf32, #tpu.memory_space<vmem>>, vector<1x128xf32>
    %25 = vector.broadcast %24 : vector<1x128xf32> to vector<64x128xf32>
    %26 = arith.addf %23, %25 : vector<64x128xf32>
    %cst_23 = arith.constant 0.000000e+00 : f32
    %27 = vector.broadcast %cst_23 : f32 to vector<64x128xf32>
    %28 = arith.maximumf %26, %27 : vector<64x128xf32>
    %c0_24 = arith.constant 0 : index
    %c0_25 = arith.constant 0 : index
    %29 = vector.load %arg10[%c0_24, %c0_25] : memref<128x128xf32, #tpu.memory_space<vmem>>, vector<128x128xf32>
    %cst_26 = arith.constant dense<0.000000e+00> : vector<64x128xf32>
    %30 = tpu.matmul %28, %29, %cst_26 {dimension_numbers = #tpu.dot_dimension_numbers<[1], [0], [0], [1], [0, 0, 1, 1], [], []>} : vector<64x128xf32>, vector<128x128xf32>, vector<64x128xf32> -> vector<64x128xf32>
    %c0_27 = arith.constant 0 : index
    %c0_28 = arith.constant 0 : index
    %31 = vector.load %arg11[%c0_27, %c0_28] : memref<1x128xf32, #tpu.memory_space<vmem>>, vector<1x128xf32>
    %32 = vector.broadcast %31 : vector<1x128xf32> to vector<64x128xf32>
    %33 = arith.addf %30, %32 : vector<64x128xf32>
    %c0_29 = arith.constant 0 : index
    %c0_30 = arith.constant 0 : index
    %34 = vector.load %arg12[%c0_29, %c0_30] : memref<64x128xf32, #tpu.memory_space<vmem>>, vector<64x128xf32>
    tpu.vector_store %arg12[%c0_29, %c0_30], %33 {strides = array<i32>} : memref<64x128xf32, #tpu.memory_space<vmem>>, vector<64x128xf32>,
    return
  }
  func.func @transform_0(%arg0: i32) -> (i32, i32) {
    %c0_i32 = arith.constant 0 : i32
    %c0_i32_0 = arith.constant 0 : i32
    return %arg0, %c0_i32 : i32, i32
  }
  func.func @transform_1(%arg0: i32) -> (i32, i32) {
    %c0_i32 = arith.constant 0 : i32
    %c0_i32_0 = arith.constant 0 : i32
    %c0_i32_1 = arith.constant 0 : i32
    return %c0_i32, %c0_i32_0 : i32, i32
  }
  func.func @transform_2(%arg0: i32) -> (i32, i32) {
    %c0_i32 = arith.constant 0 : i32
    %c0_i32_0 = arith.constant 0 : i32
    %c0_i32_1 = arith.constant 0 : i32
    return %c0_i32, %c0_i32_0 : i32, i32
  }
  func.func @transform_3(%arg0: i32) -> (i32, i32) {
    %c0_i32 = arith.constant 0 : i32
    %c0_i32_0 = arith.constant 0 : i32
    %c0_i32_1 = arith.constant 0 : i32
    return %c0_i32, %c0_i32_0 : i32, i32
  }
  func.func @transform_4(%arg0: i32) -> (i32, i32) {
    %c0_i32 = arith.constant 0 : i32
    %c0_i32_0 = arith.constant 0 : i32
    %c0_i32_1 = arith.constant 0 : i32
    return %c0_i32, %c0_i32_0 : i32, i32
  }
  func.func @transform_5(%arg0: i32) -> (i32, i32) {
    %c0_i32 = arith.constant 0 : i32
    %c0_i32_0 = arith.constant 0 : i32
    %c0_i32_1 = arith.constant 0 : i32
    return %c0_i32, %c0_i32_0 : i32, i32
  }
  func.func @transform_6(%arg0: i32) -> (i32, i32) {
    %c0_i32 = arith.constant 0 : i32
    %c0_i32_0 = arith.constant 0 : i32
    %c0_i32_1 = arith.constant 0 : i32
    return %c0_i32, %c0_i32_0 : i32, i32
  }
  func.func @transform_7(%arg0: i32) -> (i32, i32) {
    %c0_i32 = arith.constant 0 : i32
    %c0_i32_0 = arith.constant 0 : i32
    %c0_i32_1 = arith.constant 0 : i32
    return %c0_i32, %c0_i32_0 : i32, i32
  }
  func.func @transform_8(%arg0: i32) -> (i32, i32) {
    %c0_i32 = arith.constant 0 : i32
    %c0_i32_0 = arith.constant 0 : i32
    %c0_i32_1 = arith.constant 0 : i32
    return %c0_i32, %c0_i32_0 : i32, i32
  }
  func.func @transform_9(%arg0: i32) -> (i32, i32) {
    %c0_i32 = arith.constant 0 : i32
    %c0_i32_0 = arith.constant 0 : i32
    %c0_i32_1 = arith.constant 0 : i32
    return %c0_i32, %c0_i32_0 : i32, i32
  }
  func.func @transform_10(%arg0: i32) -> (i32, i32) {
    %c0_i32 = arith.constant 0 : i32
    %c0_i32_0 = arith.constant 0 : i32
    %c0_i32_1 = arith.constant 0 : i32
    return %c0_i32, %c0_i32_0 : i32, i32
  }
  func.func @transform_11(%arg0: i32) -> (i32, i32) {
    %c0_i32 = arith.constant 0 : i32
    %c0_i32_0 = arith.constant 0 : i32
    return %arg0, %c0_i32 : i32, i32
  }
}

</mosaic_0001>

<bundles_post_ra>
// kernel: _mlp_predict_adj_impl.1
= control target key start
LH: loop header
LB: loop body
LE: loop exit
PB: predicated region body
PF: predicated region fallthrough
CT: control target
= control target key end

     0   :  { %s923_s17 = smov 0   ;;  %s1222_s0 = inlined_call_operand.vmem [shape: f32[128,128], index: 0, kind: input, shape index: {}]   ;;  %s1223_s1 = inlined_call_operand.vmem [shape: f32[128,128], index: 1, kind: input, shape index: {}]   ;;  %s1224_s2 = inlined_call_operand.vmem [shape: f32[1,128], index: 2, kind: input, shape index: {}]   ;;  %s1225_s3 = inlined_call_operand.vmem [shape: f32[128,128], index: 3, kind: input, shape index: {}]   ;;  %s1226_s4 = inlined_call_operand.vmem [shape: f32[1,128], index: 4, kind: input, shape index: {}]   ;;  %s1227_s5 = inlined_call_operand.vmem [shape: f32[128,128], index: 5, kind: input, shape index: {}]   ;;  %s1228_s6 = inlined_call_operand.vmem [shape: f32[1,128], index: 6, kind: input, shape index: {}]   ;;  %s1229_s7 = inlined_call_operand.vmem [shape: f32[128,128], index: 7, kind: input, shape index: {}]   ;;  %s1230_s8 = inlined_call_operand.vmem [shape: f32[1,128], index: 8, kind: input, shape index: {}]   ;;  %s1231_s9 = inlined_call_operand.vmem [shape: f32[128,128], index: 9, kind: input, shape index: {}]   ;;  %s1232_s10 = inlined_call_operand.vmem [shape: f32[1,128], index: 10, kind: input, shape index: {}]   ;;  %s1233_s11 = inlined_call_operand.vmem [shape: f32[128,128], index: 11, kind: output, shape index: {}]  }
   0x1 LB: > { %s799_s18 = sadd.s32 4294967295, %s861_s17   ;;  %p803_p0 = scmp.ge.s32.totalorder %s861_s17, 1  ;;  %s861_s17 = sphi %s923_s17, %s21_s17  }
   0x2   : > { %p338_p1 = scmp.lt.s32.totalorder %s861_s17, 3 }
   0x4   : > { %p339_p2 = pnand %p803_p0, %p338_p1 }
   0x5   : > { %s804_s16 = sshll.u32 (!%p339_p2), %s799_s18, 3 }
   0x6   : > { %342 = sbr.rel (%p339_p2) target bundleno = 766 (0x2fe), region = 64  ;;  %p379_p3 = scmp.lt.s32.totalorder (!%p339_p2), %s804_s16, 15 }
   0xb   : > { %v413_v0 = vld [vmem:[%s1223_s1 + $0x78] sm:$0xff]  ;;  %v412_v1 = vld [vmem:[%s1223_s1 + $0x70] sm:$0xff]  ;;  %v411_v2 = vld [vmem:[%s1223_s1 + $0x68] sm:$0xff]  ;;  %s1235_s16 = smov (!%p379_p3, %s804_s16), 15 }
   0xc   : > { %418 = vmatpush.msra.mxu0 %v413_v0  ;;  %810 = vmatpush.msra.mxu1 %v413_v0  ;;  %v410_v3 = vld [vmem:[%s1223_s1 + $0x60] sm:$0xff]  ;;  %v409_v4 = vld [vmem:[%s1223_s1 + $0x58] sm:$0xff]  ;;  %v408_v5 = vld [vmem:[%s1223_s1 + $0x50] sm:$0xff]  ;;  %s805_s28 = sshll.u32 %s1235_s16, 3 }
   0xd   : > { %v407_v6 = vld [vmem:[%s1223_s1 + $0x48] sm:$0xff]  ;;  %v406_v7 = vld [vmem:[%s1223_s1 + $0x40] sm:$0xff]  ;;  %v405_v8 = vld [vmem:[%s1223_s1 + $0x38] sm:$0xff]  ;;  %s984_s19 = scalar_lea.vmem %s1222_s0, %s805_s28  ;;  %s388_s20 = scalar_lea.vmem %s1233_s11, %s805_s28 }
   0xe   : > { %419 = vmatpush.msra.mxu0 %v412_v1  ;;  %811 = vmatpush.msra.mxu1 %v412_v1  ;;  %v404_v9 = vld [vmem:[%s1223_s1 + $0x30] sm:$0xff]  ;;  %v403_v10 = vld [vmem:[%s1223_s1 + $0x28] sm:$0xff]  ;;  %v402_v11 = vld [vmem:[%s1223_s1 + $0x20] sm:$0xff] }
   0xf   : > { %v401_v12 = vld [vmem:[%s1223_s1 + $0x18] sm:$0xff]  ;;  %v400_v13 = vld [vmem:[%s1223_s1 + $0x10] sm:$0xff]  ;;  %v399_v14 = vld [vmem:[%s1223_s1 + $0x8] sm:$0xff] }
  0x10   : > { %420 = vmatpush.msra.mxu0 %v411_v2  ;;  %812 = vmatpush.msra.mxu1 %v411_v2  ;;  %v398_v15 = vld [vmem:[%s1223_s1] sm:$0xff]  ;;  %v482_v18 = vld [vmem:[%s1225_s3 + $0x78] sm:$0xff]  ;;  %v481_v19 = vld [vmem:[%s1225_s3 + $0x70] sm:$0xff] }
  0x11   : > { %v390_v16 = vld [vmem:[%s984_s19] sm:$0xff]  ;;  %v480_v20 = vld [vmem:[%s1225_s3 + $0x68] sm:$0xff]  ;;  %v478_v24 = vld [vmem:[%s1225_s3 + $0x58] sm:$0xff] }
  0x12   : > { %421 = vmatpush.msra.mxu0 %v410_v3  ;;  %813 = vmatpush.msra.mxu1 %v410_v3  ;;  %v394_v17 = vld [vmem:[%s984_s19 + $0x20] sm:$0xff]  ;;  %v391_v22 = vld [vmem:[%s984_s19 + $0x8] sm:$0xff]  ;;  %v477_v25 = vld [vmem:[%s1225_s3 + $0x50] sm:$0xff] }
  0x13   : > { %v479_v21 = vld [vmem:[%s1225_s3 + $0x60] sm:$0xff]  ;;  %v395_v23 = vld [vmem:[%s984_s19 + $0x28] sm:$0xff]  ;;  %v392_v28 = vld [vmem:[%s984_s19 + $0x10] sm:$0xff] }
  0x14   : > { %422 = vmatpush.msra.mxu0 %v409_v4  ;;  %814 = vmatpush.msra.mxu1 %v409_v4  ;;  %v476_v26 = vld [vmem:[%s1225_s3 + $0x48] sm:$0xff]  ;;  %v475_v27 = vld [vmem:[%s1225_s3 + $0x40] sm:$0xff]  ;;  %v396_v29 = vld [vmem:[%s984_s19 + $0x30] sm:$0xff] }
  0x15   : > { %v474_v30 = vld [vmem:[%s1225_s3 + $0x38] sm:$0xff]  ;;  %v473_v31 = vld [vmem:[%s1225_s3 + $0x30] sm:$0xff]  ;;  %v472_v32 = vld [vmem:[%s1225_s3 + $0x28] sm:$0xff] }
  0x16   : > { %423 = vmatpush.msra.mxu0 %v408_v5  ;;  %815 = vmatpush.msra.mxu1 %v408_v5  ;;  %v471_v33 = vld [vmem:[%s1225_s3 + $0x20] sm:$0xff]  ;;  %v393_v34 = vld [vmem:[%s984_s19 + $0x18] sm:$0xff]  ;;  %v469_v37 = vld [vmem:[%s1225_s3 + $0x10] sm:$0xff] }
  0x17   : > { %v397_v35 = vld [vmem:[%s984_s19 + $0x38] sm:$0xff]  ;;  %v468_v38 = vld [vmem:[%s1225_s3 + $0x8] sm:$0xff]  ;;  %v467_v39 = vld [vmem:[%s1225_s3] sm:$0xff] }
  0x18   : > { %424 = vmatpush.msra.mxu0 %v407_v6  ;;  %816 = vmatpush.msra.mxu1 %v407_v6  ;;  %v470_v36 = vld [vmem:[%s1225_s3 + $0x18] sm:$0xff]  ;;  %v850_v40 = vld [vmem:[%s1224_s2] ss:$0 sm:$0xff]  ;;  %v550_v56 = vld [vmem:[%s1227_s5 + $0x70] sm:$0xff] }
  0x19   : > { %v551_v55 = vld [vmem:[%s1227_s5 + $0x78] sm:$0xff]  ;;  %v549_v58 = vld [vmem:[%s1227_s5 + $0x68] sm:$0xff]  ;;  %v548_v60 = vld [vmem:[%s1227_s5 + $0x60] sm:$0xff] }
  0x1a   : > { %425 = vmatpush.msra.mxu0 %v406_v7  ;;  %817 = vmatpush.msra.mxu1 %v406_v7  ;;  %v547_v61 = vld [vmem:[%s1227_s5 + $0x58] sm:$0xff]  ;;  %v546_v63 = vld [vmem:[%s1227_s5 + $0x50] sm:$0xff]  ;;  %v545_v0 = vld [vmem:[%s1227_s5 + $0x48] sm:$0xff] }
  0x1b   : > { %556 = vmatpush.msra.mxu2 %v551_v55  ;;  %v544_v3 = vld [vmem:[%s1227_s5 + $0x40] sm:$0xff]  ;;  %v543_v4 = vld [vmem:[%s1227_s5 + $0x38] sm:$0xff]  ;;  %v542_v6 = vld [vmem:[%s1227_s5 + $0x30] sm:$0xff] }
  0x1c   : > { %426 = vmatpush.msra.mxu0 %v405_v8  ;;  %818 = vmatpush.msra.mxu1 %v405_v8  ;;  %v541_v7 = vld [vmem:[%s1227_s5 + $0x28] sm:$0xff]  ;;  %v607_v55 = vld [vmem:[%s1229_s7 + $0x10] sm:$0xff] }
  0x1d   : > { %557 = vmatpush.msra.mxu2 %v550_v56  ;;  %v606_v56 = vld [vmem:[%s1229_s7 + $0x8] sm:$0xff] }
  0x1e   : > { %427 = vmatpush.msra.mxu0 %v404_v9  ;;  %819 = vmatpush.msra.mxu1 %v404_v9  ;;  %v540_v9 = vld [vmem:[%s1227_s5 + $0x20] sm:$0xff] }
  0x1f   : > { %558 = vmatpush.msra.mxu2 %v549_v58  ;;  %v1150_v58 = vld [vmem:[%s1228_s6] ss:$0 sm:$0xff] }
  0x20   : > { %428 = vmatpush.msra.mxu0 %v403_v10  ;;  %820 = vmatpush.msra.mxu1 %v403_v10 }
  0x21   : > { %559 = vmatpush.msra.mxu2 %v548_v60 }
  0x22   : > { %429 = vmatpush.msra.mxu0 %v402_v11  ;;  %821 = vmatpush.msra.mxu1 %v402_v11  ;;  %v539_v11 = vld [vmem:[%s1227_s5 + $0x18] sm:$0xff] }
  0x23   : > { %560 = vmatpush.msra.mxu2 %v547_v61 }
  0x24   : > { %430 = vmatpush.msra.mxu0 %v401_v12  ;;  %822 = vmatpush.msra.mxu1 %v401_v12 }
  0x25   : > { %561 = vmatpush.msra.mxu2 %v546_v63 }
  0x26   : > { %431 = vmatpush.msra.mxu0 %v400_v13  ;;  %823 = vmatpush.msra.mxu1 %v400_v13 }
  0x27   : > { %562 = vmatpush.msra.mxu2 %v545_v0 }
  0x28   : > { %432 = vmatpush.msra.mxu0 %v399_v14  ;;  %824 = vmatpush.msra.mxu1 %v399_v14  ;;  %v538_v14 = vld [vmem:[%s1227_s5 + $0x10] sm:$0xff] }
  0x29   : > { %563 = vmatpush.msra.mxu2 %v544_v3 }
  0x2a   : > { %433 = vmatpush.msra.mxu0 %v398_v15  ;;  %825 = vmatpush.msra.mxu1 %v398_v15  ;;  %v537_v15 = vld [vmem:[%s1227_s5 + $0x8] sm:$0xff] }
  0x2b   : > { %434 = vmatmul.f32.vlgmr.msra.gmra.mxu0 %v390_v16  ;;  %446 = vmatmul.f32.vlgmr.msra.gmra.mxu1 %v394_v17  ;;  %v536_v16 = vld [vmem:[%s1227_s5] sm:$0xff] }
  0x2c   : > { %487 = vmatpush.msrb.mxu1 %v482_v18  ;;  %564 = vmatpush.msra.mxu2 %v543_v4  ;;  %v851_v17 = vld [vmem:[%s1226_s4] ss:$0 sm:$0xff] }
  0x2e   : > { %488 = vmatpush.msrb.mxu1 %v481_v19  ;;  %565 = vmatpush.msra.mxu2 %v542_v6 }
  0x30   : > { %489 = vmatpush.msrb.mxu1 %v480_v20  ;;  %566 = vmatpush.msra.mxu2 %v541_v7  ;;  %v689_v7 = vld [vmem:[%s1231_s9 + $0x78] sm:$0xff] }
  0x31   : > { %694 = vmatpush.msrb.mxu0 %v689_v7 }
  0x32   : > { %490 = vmatpush.msrb.mxu1 %v479_v21  ;;  %567 = vmatpush.msra.mxu2 %v540_v9  ;;  %v687_v9 = vld [vmem:[%s1231_s9 + $0x68] sm:$0xff] }
  0x33   : > { %437 = vmatmul.f32.gmra.mxu0 %v391_v22  ;;  %449 = vmatmul.f32.gmra.mxu1 %v395_v23 }
  0x34   : > { %491 = vmatpush.msrb.mxu1 %v478_v24  ;;  %568 = vmatpush.msra.mxu2 %v539_v11 }
  0x36   : > { %492 = vmatpush.msrb.mxu1 %v477_v25  ;;  %569 = vmatpush.msra.mxu2 %v538_v14  ;;  %v685_v14 = vld [vmem:[%s1231_s9 + $0x58] sm:$0xff] }
  0x38   : > { %493 = vmatpush.msrb.mxu1 %v476_v26  ;;  %570 = vmatpush.msra.mxu2 %v537_v15  ;;  %v684_v15 = vld [vmem:[%s1231_s9 + $0x50] sm:$0xff] }
  0x3a   : > { %494 = vmatpush.msrb.mxu1 %v475_v27  ;;  %571 = vmatpush.msra.mxu2 %v536_v16  ;;  %v683_v16 = vld [vmem:[%s1231_s9 + $0x48] sm:$0xff] }
  0x3b   : > { %440 = vmatmul.f32.gmra.mxu0 %v392_v28  ;;  %452 = vmatmul.f32.gmra.mxu1 %v396_v29 }
  0x3c   : > { %495 = vmatpush.msrb.mxu1 %v474_v30  ;;  %v620_v30 = vld [vmem:[%s1229_s7 + $0x78] sm:$0xff]  ;;  %826 = vmatpush.msrb.mxu2 %v689_v7 }
  0x3d   : > { %625 = vmatpush.msra.mxu3 %v620_v30 }
  0x3e   : > { %496 = vmatpush.msrb.mxu1 %v473_v31  ;;  %v619_v31 = vld [vmem:[%s1229_s7 + $0x70] sm:$0xff] }
  0x3f   : > { %626 = vmatpush.msra.mxu3 %v619_v31 }
  0x40   : > { %497 = vmatpush.msrb.mxu1 %v472_v32  ;;  %v618_v32 = vld [vmem:[%s1229_s7 + $0x68] sm:$0xff] }
  0x41   : > { %627 = vmatpush.msra.mxu3 %v618_v32  ;;  %v676_v32 = vld [vmem:[%s1231_s9 + $0x10] sm:$0xff] }
  0x42   : > { %498 = vmatpush.msrb.mxu1 %v471_v33 }
  0x43   : > { %443 = vmatmul.f32.gmra.mxu0 %v393_v34  ;;  %455 = vmatmul.f32.gmra.mxu1 %v397_v35  ;;  %v617_v35 = vld [vmem:[%s1229_s7 + $0x60] sm:$0xff] }
  0x44   : > { %499 = vmatpush.msrb.mxu1 %v470_v36  ;;  %628 = vmatpush.msra.mxu3 %v617_v35  ;;  %v853_v35 = vld [vmem:[%s1230_s8] ss:$0 sm:$0xff] }
  0x46   : > { %500 = vmatpush.msrb.mxu1 %v469_v37  ;;  %v616_v37 = vld [vmem:[%s1229_s7 + $0x58] sm:$0xff] }
  0x47   : > { %629 = vmatpush.msra.mxu3 %v616_v37 }
  0x48   : > { %501 = vmatpush.msrb.mxu1 %v468_v38  ;;  %v615_v38 = vld [vmem:[%s1229_s7 + $0x50] sm:$0xff] }
  0x49   : > { %630 = vmatpush.msra.mxu3 %v615_v38 }
  0x4a   : > { %502 = vmatpush.msrb.mxu1 %v467_v39  ;;  %v614_v39 = vld [vmem:[%s1229_s7 + $0x48] sm:$0xff] }
  0x4b   : > { %631 = vmatpush.msra.mxu3 %v614_v39 }
  0xa8   : > { %v435_v41 = vpop.f32.mrf.mxu0  ;;  %v447_v50 = vpop.f32.mrf.mxu1 }
  0xa9   : > { %v436_v42 = vadd.f32 %v850_v40, %v435_v41  ;;  %v448_v54 = vadd.f32 %v850_v40, %v447_v50 }
  0xab   : > { %v459_v43 = vmax.f32 %v436_v42, 0.0  ;;  %v463_v59 = vmax.f32 %v448_v54, 0.0  ;;  %v613_v42 = vld [vmem:[%s1229_s7 + $0x40] sm:$0xff] }
  0xac   : > { %632 = vmatpush.msra.mxu3 %v613_v42 }
  0xad   : > { %503 = vmatmul.f32.vlgmr.msrb.gmra.mxu1 %v459_v43 }
  0xb0   : > { %v438_v44 = vpop.f32.mrf.mxu0  ;;  %v450_v57 = vpop.f32.mrf.mxu1 }
  0xb1   : > { %v439_v45 = vadd.f32 %v850_v40, %v438_v44  ;;  %v451_v62 = vadd.f32 %v850_v40, %v450_v57  ;;  %v612_v44 = vld [vmem:[%s1229_s7 + $0x38] sm:$0xff]  ;;  %v605_v57 = vld [vmem:[%s1229_s7] sm:$0xff] }
  0xb2   : > { %633 = vmatpush.msra.mxu3 %v612_v44 }
  0xb3   : > { %v460_v46 = vmax.f32 %v439_v45, 0.0  ;;  %v464_v2 = vmax.f32 %v451_v62, 0.0  ;;  %v611_v45 = vld [vmem:[%s1229_s7 + $0x30] sm:$0xff] }
  0xb4   : > { %634 = vmatpush.msra.mxu3 %v611_v45 }
  0xb5   : > { %506 = vmatmul.f32.gmra.mxu1 %v460_v46  ;;  %v610_v46 = vld [vmem:[%s1229_s7 + $0x28] sm:$0xff] }
  0xb6   : > { %635 = vmatpush.msra.mxu3 %v610_v46 }
  0xb8   : > { %v441_v47 = vpop.f32.mrf.mxu0  ;;  %v453_v1 = vpop.f32.mrf.mxu1 }
  0xb9   : > { %v442_v48 = vadd.f32 %v850_v40, %v441_v47  ;;  %v454_v5 = vadd.f32 %v850_v40, %v453_v1 }
  0xbb   : > { %v461_v49 = vmax.f32 %v442_v48, 0.0  ;;  %v465_v8 = vmax.f32 %v454_v5, 0.0 }
  0xbd   : > { %509 = vmatmul.f32.gmra.mxu1 %v461_v49  ;;  %v609_v49 = vld [vmem:[%s1229_s7 + $0x20] sm:$0xff] }
  0xbe   : > { %636 = vmatpush.msra.mxu3 %v609_v49 }
  0xc0   : > { %v444_v51 = vpop.f32.mrf.mxu0  ;;  %v456_v10 = vpop.f32.mrf.mxu1 }
  0xc1   : > { %v445_v52 = vadd.f32 %v850_v40, %v444_v51  ;;  %v457_v12 = vadd.f32 %v850_v40, %v456_v10  ;;  %v608_v51 = vld [vmem:[%s1229_s7 + $0x18] sm:$0xff] }
  0xc2   : > { %637 = vmatpush.msra.mxu3 %v608_v51 }
  0xc3   : > { %v462_v53 = vmax.f32 %v445_v52, 0.0  ;;  %v466_v13 = vmax.f32 %v457_v12, 0.0  ;;  %v686_v12 = vld [vmem:[%s1231_s9 + $0x60] sm:$0xff] }
  0xc4   : > { %638 = vmatpush.msra.mxu3 %v607_v55 }
  0xc5   : > { %512 = vmatmul.f32.gmra.mxu1 %v462_v53 }
  0xc6   : > { %639 = vmatpush.msra.mxu3 %v606_v56 }
  0xc8   : > { %640 = vmatpush.msra.mxu3 %v605_v57 }
  0xcd   : > { %515 = vmatmul.f32.gmra.mxu1 %v463_v59 }
  0xd5   : > { %518 = vmatmul.f32.gmra.mxu1 %v464_v2 }
  0xdd   : > { %521 = vmatmul.f32.gmra.mxu1 %v465_v8  ;;  %v688_v8 = vld [vmem:[%s1231_s9 + $0x70] sm:$0xff] }
  0xde   : > { %695 = vmatpush.msrb.mxu0 %v688_v8  ;;  %827 = vmatpush.msrb.mxu2 %v688_v8 }
  0xe0   : > { %696 = vmatpush.msrb.mxu0 %v687_v9  ;;  %828 = vmatpush.msrb.mxu2 %v687_v9 }
  0xe2   : > { %697 = vmatpush.msrb.mxu0 %v686_v12  ;;  %829 = vmatpush.msrb.mxu2 %v686_v12 }
  0xe4   : > { %698 = vmatpush.msrb.mxu0 %v685_v14  ;;  %830 = vmatpush.msrb.mxu2 %v685_v14 }
  0xe5   : > { %524 = vmatmul.f32.gmra.mxu1 %v466_v13 }
  0xe6   : > { %699 = vmatpush.msrb.mxu0 %v684_v15  ;;  %831 = vmatpush.msrb.mxu2 %v684_v15 }
  0xe8   : > { %700 = vmatpush.msrb.mxu0 %v683_v16  ;;  %832 = vmatpush.msrb.mxu2 %v683_v16 }
 0x12a   : > { %v504_v18 = vpop.f32.mrf.mxu1 }
 0x12b   : > { %v505_v19 = vadd.f32 %v851_v17, %v504_v18 }
 0x12d   : > { %v528_v20 = vmax.f32 %v505_v19, 0.0  ;;  %v682_v19 = vld [vmem:[%s1231_s9 + $0x40] sm:$0xff] }
 0x12e   : > { %701 = vmatpush.msrb.mxu0 %v682_v19  ;;  %833 = vmatpush.msrb.mxu2 %v682_v19 }
 0x12f   : > { %572 = vmatmul.f32.vlgmr.msra.gmra.mxu2 %v528_v20 }
 0x132   : > { %v507_v21 = vpop.f32.mrf.mxu1 }
 0x133   : > { %v508_v22 = vadd.f32 %v851_v17, %v507_v21  ;;  %v681_v21 = vld [vmem:[%s1231_s9 + $0x38] sm:$0xff] }
 0x134   : > { %702 = vmatpush.msrb.mxu0 %v681_v21  ;;  %834 = vmatpush.msrb.mxu2 %v681_v21 }
 0x135   : > { %v529_v23 = vmax.f32 %v508_v22, 0.0  ;;  %v680_v22 = vld [vmem:[%s1231_s9 + $0x30] sm:$0xff] }
 0x136   : > { %703 = vmatpush.msrb.mxu0 %v680_v22  ;;  %835 = vmatpush.msrb.mxu2 %v680_v22 }
 0x137   : > { %575 = vmatmul.f32.gmra.mxu2 %v529_v23  ;;  %v679_v23 = vld [vmem:[%s1231_s9 + $0x28] sm:$0xff] }
 0x138   : > { %704 = vmatpush.msrb.mxu0 %v679_v23  ;;  %836 = vmatpush.msrb.mxu2 %v679_v23 }
 0x13a   : > { %v510_v24 = vpop.f32.mrf.mxu1 }
 0x13b   : > { %v511_v25 = vadd.f32 %v851_v17, %v510_v24 }
 0x13d   : > { %v530_v26 = vmax.f32 %v511_v25, 0.0 }
 0x13f   : > { %578 = vmatmul.f32.gmra.mxu2 %v530_v26  ;;  %v678_v26 = vld [vmem:[%s1231_s9 + $0x20] sm:$0xff] }
 0x140   : > { %705 = vmatpush.msrb.mxu0 %v678_v26  ;;  %837 = vmatpush.msrb.mxu2 %v678_v26 }
 0x142   : > { %v513_v27 = vpop.f32.mrf.mxu1 }
 0x143   : > { %v514_v28 = vadd.f32 %v851_v17, %v513_v27 }
 0x145   : > { %v531_v29 = vmax.f32 %v514_v28, 0.0  ;;  %v677_v28 = vld [vmem:[%s1231_s9 + $0x18] sm:$0xff] }
 0x146   : > { %706 = vmatpush.msrb.mxu0 %v677_v28  ;;  %838 = vmatpush.msrb.mxu2 %v677_v28 }
 0x147   : > { %581 = vmatmul.f32.gmra.mxu2 %v531_v29 }
 0x148   : > { %707 = vmatpush.msrb.mxu0 %v676_v32  ;;  %839 = vmatpush.msrb.mxu2 %v676_v32 }
 0x14a   : > { %v516_v33 = vpop.f32.mrf.mxu1 }
 0x14b   : > { %v517_v34 = vadd.f32 %v851_v17, %v516_v33  ;;  %v675_v33 = vld [vmem:[%s1231_s9 + $0x8] sm:$0xff] }
 0x14c   : > { %708 = vmatpush.msrb.mxu0 %v675_v33  ;;  %840 = vmatpush.msrb.mxu2 %v675_v33 }
 0x14d   : > { %v532_v36 = vmax.f32 %v517_v34, 0.0  ;;  %v674_v34 = vld [vmem:[%s1231_s9] sm:$0xff] }
 0x14e   : > { %709 = vmatpush.msrb.mxu0 %v674_v34  ;;  %841 = vmatpush.msrb.mxu2 %v674_v34 }
 0x14f   : > { %584 = vmatmul.f32.gmra.mxu2 %v532_v36 }
 0x152   : > { %v519_v40 = vpop.f32.mrf.mxu1 }
 0x153   : > { %v520_v41 = vadd.f32 %v851_v17, %v519_v40 }
 0x155   : > { %v533_v43 = vmax.f32 %v520_v41, 0.0 }
 0x157   : > { %587 = vmatmul.f32.gmra.mxu2 %v533_v43 }
 0x15a   : > { %v522_v47 = vpop.f32.mrf.mxu1 }
 0x15b   : > { %v523_v48 = vadd.f32 %v851_v17, %v522_v47 }
 0x15d   : > { %v534_v50 = vmax.f32 %v523_v48, 0.0 }
 0x15f   : > { %590 = vmatmul.f32.gmra.mxu2 %v534_v50 }
 0x162   : > { %v525_v52 = vpop.f32.mrf.mxu1 }
 0x163   : > { %v526_v53 = vadd.f32 %v851_v17, %v525_v52 }
 0x165   : > { %v535_v54 = vmax.f32 %v526_v53, 0.0 }
 0x167   : > { %593 = vmatmul.f32.gmra.mxu2 %v535_v54 }
 0x1b2   : > { %v573_v59 = vpop.f32.mrf.mxu2 }
 0x1b3   : > { %v574_v60 = vadd.f32 %v1150_v58, %v573_v59 }
 0x1b5   : > { %v597_v61 = vmax.f32 %v574_v60, 0.0  ;;  %v854_v60 = vld [vmem:[%s1232_s10] ss:$0 sm:$0xff] }
 0x1b7   : > { %641 = vmatmul.f32.vlgmr.msra.gmra.mxu3 %v597_v61 }
 0x1ba   : > { %v576_v62 = vpop.f32.mrf.mxu2 }
 0x1bb   : > { %v577_v63 = vadd.f32 %v1150_v58, %v576_v62 }
 0x1bd   : > { %v598_v0 = vmax.f32 %v577_v63, 0.0 }
 0x1bf   : > { %644 = vmatmul.f32.gmra.mxu3 %v598_v0 }
 0x1c2   : > { %v579_v1 = vpop.f32.mrf.mxu2 }
 0x1c3   : > { %v580_v2 = vadd.f32 %v1150_v58, %v579_v1 }
 0x1c5   : > { %v599_v3 = vmax.f32 %v580_v2, 0.0 }
 0x1c7   : > { %647 = vmatmul.f32.gmra.mxu3 %v599_v3 }
 0x1ca   : > { %v582_v4 = vpop.f32.mrf.mxu2 }
 0x1cb   : > { %v583_v5 = vadd.f32 %v1150_v58, %v582_v4 }
 0x1cd   : > { %v600_v6 = vmax.f32 %v583_v5, 0.0 }
 0x1cf   : > { %650 = vmatmul.f32.gmra.mxu3 %v600_v6 }
 0x1d2   : > { %v585_v10 = vpop.f32.mrf.mxu2 }
 0x1d3   : > { %v586_v11 = vadd.f32 %v1150_v58, %v585_v10 }
 0x1d5   : > { %v601_v13 = vmax.f32 %v586_v11, 0.0 }
 0x1d7   : > { %653 = vmatmul.f32.gmra.mxu3 %v601_v13 }
 0x1da   : > { %v588_v17 = vpop.f32.mrf.mxu2 }
 0x1db   : > { %v589_v18 = vadd.f32 %v1150_v58, %v588_v17 }
 0x1dd   : > { %v602_v20 = vmax.f32 %v589_v18, 0.0 }
 0x1df   : > { %656 = vmatmul.f32.gmra.mxu3 %v602_v20 }
 0x1e2   : > { %v591_v24 = vpop.f32.mrf.mxu2 }
 0x1e3   : > { %v592_v25 = vadd.f32 %v1150_v58, %v591_v24 }
 0x1e5   : > { %v603_v27 = vmax.f32 %v592_v25, 0.0 }
 0x1e7   : > { %659 = vmatmul.f32.gmra.mxu3 %v603_v27 }
 0x1ea   : > { %v594_v29 = vpop.f32.mrf.mxu2 }
 0x1eb   : > { %v595_v30 = vadd.f32 %v1150_v58, %v594_v29 }
 0x1ed   : > { %v604_v31 = vmax.f32 %v595_v30, 0.0 }
 0x1ef   : > { %662 = vmatmul.f32.gmra.mxu3 %v604_v31 }
 0x23a   : > { %v642_v36 = vpop.f32.mrf.mxu3 }
 0x23b   : > { %v643_v37 = vadd.f32 %v853_v35, %v642_v36 }
 0x23d   : > { %v666_v38 = vmax.f32 %v643_v37, 0.0 }
 0x23f   : > { %710 = vmatmul.f32.vlgmr.msrb.gmra.mxu0 %v666_v38 }
 0x242   : > { %v645_v39 = vpop.f32.mrf.mxu3 }
 0x243   : > { %v646_v40 = vadd.f32 %v853_v35, %v645_v39 }
 0x245   : > { %v667_v41 = vmax.f32 %v646_v40, 0.0 }
 0x247   : > { %713 = vmatmul.f32.gmra.mxu0 %v667_v41 }
 0x24a   : > { %v648_v42 = vpop.f32.mrf.mxu3 }
 0x24b   : > { %v649_v43 = vadd.f32 %v853_v35, %v648_v42 }
 0x24d   : > { %v668_v44 = vmax.f32 %v649_v43, 0.0 }
 0x24f   : > { %716 = vmatmul.f32.gmra.mxu0 %v668_v44 }
 0x252   : > { %v651_v45 = vpop.f32.mrf.mxu3 }
 0x253   : > { %v652_v46 = vadd.f32 %v853_v35, %v651_v45 }
 0x255   : > { %v669_v47 = vmax.f32 %v652_v46, 0.0 }
 0x257   : > { %719 = vmatmul.f32.gmra.mxu0 %v669_v47 }
 0x25a   : > { %v654_v48 = vpop.f32.mrf.mxu3 }
 0x25b   : > { %v655_v49 = vadd.f32 %v853_v35, %v654_v48 }
 0x25d   : > { %v670_v50 = vmax.f32 %v655_v49, 0.0 }
 0x25f   : > { %722 = vmatmul.f32.gmra.mxu0 %v670_v50 }
 0x262   : > { %v657_v51 = vpop.f32.mrf.mxu3 }
 0x263   : > { %v658_v52 = vadd.f32 %v853_v35, %v657_v51 }
 0x265   : > { %v671_v53 = vmax.f32 %v658_v52, 0.0 }
 0x267   : > { %725 = vmatmul.f32.gmra.mxu0 %v671_v53 }
 0x26a   : > { %v660_v54 = vpop.f32.mrf.mxu3 }
 0x26b   : > { %v661_v55 = vadd.f32 %v853_v35, %v660_v54 }
 0x26d   : > { %v672_v56 = vmax.f32 %v661_v55, 0.0 }
 0x26f   : > { %728 = vmatmul.f32.vlgmr.msrb.gmra.mxu2 %v672_v56 }
 0x272   : > { %v663_v57 = vpop.f32.mrf.mxu3 }
 0x273   : > { %v664_v58 = vadd.f32 %v853_v35, %v663_v57 }
 0x275   : > { %v673_v59 = vmax.f32 %v664_v58, 0.0 }
 0x277   : > { %731 = vmatmul.f32.gmra.mxu2 %v673_v59 }
 0x2bc   : > { %v711_v61 = vpop.f32.mrf.mxu0 }
 0x2bd   : > { %v712_v62 = vadd.f32 %v854_v60, %v711_v61 }
 0x2bf   : > { %735 = vst [vmem:[%s388_s20] sm:$0xff] %v712_v62 }
 0x2c4   : > { %v714_v63 = vpop.f32.mrf.mxu0 }
 0x2c5   : > { %v715_v0 = vadd.f32 %v854_v60, %v714_v63 }
 0x2c7   : > { %736 = vst [vmem:[%s388_s20 + $0x8] sm:$0xff] %v715_v0 }
 0x2cc   : > { %v717_v1 = vpop.f32.mrf.mxu0 }
 0x2cd   : > { %v718_v2 = vadd.f32 %v854_v60, %v717_v1 }
 0x2cf   : > { %737 = vst [vmem:[%s388_s20 + $0x10] sm:$0xff] %v718_v2 }
 0x2d4   : > { %v720_v3 = vpop.f32.mrf.mxu0 }
 0x2d5   : > { %v721_v4 = vadd.f32 %v854_v60, %v720_v3 }
 0x2d7   : > { %738 = vst [vmem:[%s388_s20 + $0x18] sm:$0xff] %v721_v4 }
 0x2dc   : > { %v723_v5 = vpop.f32.mrf.mxu0 }
 0x2dd   : > { %v724_v6 = vadd.f32 %v854_v60, %v723_v5 }
 0x2df   : > { %739 = vst [vmem:[%s388_s20 + $0x20] sm:$0xff] %v724_v6 }
 0x2e4   : > { %v726_v7 = vpop.f32.mrf.mxu0 }
 0x2e5   : > { %v727_v8 = vadd.f32 %v854_v60, %v726_v7 }
 0x2e7   : > { %740 = vst [vmem:[%s388_s20 + $0x28] sm:$0xff] %v727_v8 }
 0x2f2   : > { %v729_v9 = vpop.f32.mrf.mxu2 }
 0x2f3   : > { %v730_v10 = vadd.f32 %v854_v60, %v729_v9 }
 0x2f5   : > { %741 = vst [vmem:[%s388_s20 + $0x30] sm:$0xff] %v730_v10 }
 0x2fa   : > { %v732_v11 = vpop.f32.mrf.mxu2 }
 0x2fb   : > { %v733_v12 = vadd.f32 %v854_v60, %v732_v11 }
 0x2fd   : > { %742 = vst [vmem:[%s388_s20 + $0x38] sm:$0xff] %v733_v12 }
 0x2fe PF: > { %s21_s17 = sadd.s32 1, %s861_s17  }
 0x2ff   : > { %p18_p4 = scmp.ge.s32.totalorder %s21_s17, 4  }
 0x301   :  { %20 = sbr.rel (!%p18_p4) target bundleno = 1 (0x1), region = 94 }

</bundles_post_ra>
